<compile_context>
chip_gen: v6e
topology: v6e:2x2x1
jax: 0.10.0
libtpu: 0.0.40
codegen_flags: <defaults>
</compile_context>

<pallas_src>
import functools

import jax
import jax.numpy as jnp
from jax.experimental import pallas as pl
from jax.experimental.pallas import tpu as pltpu

_LANE = 128


def _round_up(n: int, m: int) -> int:
    return ((n + m - 1) // m) * m


def _tpu_kind() -> str:
    try:
        return (jax.devices()[0].device_kind or "").lower()
    except Exception:
        return ""


def _is_v5(kind: str) -> bool:
    return "v5" in kind


def _num_tensorcores(kind: str) -> int:
    # v7x has 2 TensorCores per chip; v5e/v6e have 1.
    return 2 if "v7" in kind else 1


def _mlp_kernel(z_ref, w0_ref, b0_ref, w1_ref, b1_ref, w2_ref, b2_ref, o_ref,
                *, act_dtype):
    """One batch tile of the 3-layer MLP.

    z_ref : [TILE_B, K]        (K = obs_dim + act_dim, tiny)
    w0_ref: [K, H1p]   f32     b0_ref: [1, H1p] f32
    w1_ref: [H1p, H2p] cdtype  b1_ref: [1, H2p] f32
    w2_ref: [H2p, Op ] cdtype  b2_ref: [1, Op ] f32
    o_ref : [TILE_B, Op]       (final output dtype)

    act_dtype: dtype used for the tanh / activation path
               (bf16 on v6e/v7x fast path, f32 on v5e or f32 compute path).
    """
    z = z_ref[...].astype(jnp.float32)            # [TB, K]
    w0 = w0_ref[...]                              # [K, H1p] f32

    # Layer 0: K is tiny (e.g. 3) -> VPU broadcast-FMAs in f32, frees the MXU.
    h1_pre = b0_ref[...]                          # [1, H1p] broadcasts over TB
    for k in range(z_ref.shape[1]):               # static unroll, K small
        h1_pre = h1_pre + z[:, k:k + 1] * w0[k:k + 1, :]

    # tanh in act_dtype (bf16 EUP on v6e/v7x halves transcendental time and
    # feeds the MXU directly with no extra cast; f32 on v5e).
    h1 = jnp.tanh(h1_pre.astype(act_dtype)).astype(w1_ref.dtype)   # [TB, H1p]

    # Layer 1: MXU matmul (bf16 operands by default), f32 accumulation,
    # bias add kept in f32, tanh in act_dtype.
    h2_pre = (jnp.dot(h1, w1_ref[...], preferred_element_type=jnp.float32)
              + b1_ref[...])                      # [TB, H2p] f32
    h2 = jnp.tanh(h2_pre.astype(act_dtype)).astype(w2_ref.dtype)   # [TB, H2p]

    # Layer 2: MXU matmul, no activation; bias add in f32.
    y = (jnp.dot(h2, w2_ref[...], preferred_element_type=jnp.float32)
         + b2_ref[...])                           # [TB, Op] f32

    o_ref[...] = y.astype(o_ref.dtype)


def prepare_mlp_params(params, compute_dtype=jnp.bfloat16):
    """One-time parameter prep (hoist out of the hot loop).

    params: ((w0, b0), (w1, b1), (w2, b2)) with torch Linear layout w=[out, in].
    Transposes to [in, out], zero-pads feature dims to 128-lane multiples
    (exact: padded hidden units are tanh(0)=0, padded weight rows are 0), and
    casts the two big weights to compute_dtype (MXU operand dtype).
    """
    (w0, b0), (w1, b1), (w2, b2) = params
    d_in = w0.shape[1]
    h1_dim, h2_dim, out_dim = w0.shape[0], w1.shape[0], w2.shape[0]
    h1p = _round_up(h1_dim, _LANE)
    h2p = _round_up(h2_dim, _LANE)
    op = _round_up(out_dim, _LANE)

    w0_t = jnp.zeros((d_in, h1p), jnp.float32).at[:, :h1_dim].set(
        w0.T.astype(jnp.float32))
    b0_r = jnp.zeros((1, h1p), jnp.float32).at[:, :h1_dim].set(
        b0.astype(jnp.float32))
    w1_t = jnp.zeros((h1p, h2p), compute_dtype).at[:h1_dim, :h2_dim].set(
        w1.T.astype(compute_dtype))
    b1_r = jnp.zeros((1, h2p), jnp.float32).at[:, :h2_dim].set(
        b1.astype(jnp.float32))
    w2_t = jnp.zeros((h2p, op), compute_dtype).at[:h2_dim, :out_dim].set(
        w2.T.astype(compute_dtype))
    b2_r = jnp.zeros((1, op), jnp.float32).at[:, :out_dim].set(
        b2.astype(jnp.float32))

    return dict(
        tensors=(w0_t, b0_r, w1_t, b1_r, w2_t, b2_r),
        d_in=d_in,
        out_dim=out_dim,
        padded_dims=(h1p, h2p, op),
        compute_dtype=jnp.dtype(compute_dtype),
    )


def mlp_forward_prepped(x, u, prepped, *, tile_b=None, out_dtype=None,
                        bf16_vector_math=None):
    """Pallas MLP forward using pre-prepped parameters (the hot-loop entry)."""
    w0_t, b0_r, w1_t, b1_r, w2_t, b2_r = prepped["tensors"]
    d_in, out_dim = prepped["d_in"], prepped["out_dim"]
    h1p, h2p, op = prepped["padded_dims"]
    B = x.shape[0]
    assert d_in == x.shape[1] + u.shape[1]

    kind = _tpu_kind()
    compute_is_bf16 = prepped["compute_dtype"] == jnp.dtype(jnp.bfloat16)
    if bf16_vector_math is None:
        # bf16 tanh / activation path only where the VPU/EUP support bf16.
        bf16_vector_math = compute_is_bf16 and not _is_v5(kind)
    act_dtype = (jnp.bfloat16 if (bf16_vector_math and compute_is_bf16)
                 else jnp.float32)

    out_dtype = x.dtype if out_dtype is None else out_dtype

    # ---- wrapper-side glue: single concat (one XLA op) ---------------------
    z = jnp.concatenate([x, u], axis=-1).astype(jnp.float32)      # [B, d_in]

    # ---- batch grid ---------------------------------------------------------
    num_tc = _num_tensorcores(kind)
    if tile_b is None:
        cap = 1024 if _is_v5(kind) else 2048   # stay under scoped-VMEM defaults
        want = pl.cdiv(B, num_tc) if num_tc > 1 else B   # >=2 steps on v7x
        tile_b = min(cap, _round_up(max(want, 8), 8))
    else:
        tile_b = max(8, _round_up(tile_b, 8))
    tile_b = min(tile_b, _round_up(max(B, 8), 8))
    b_pad = _round_up(B, tile_b)
    if b_pad != B:
        z = jnp.zeros((b_pad, d_in), z.dtype).at[:B, :].set(z)
    grid = (b_pad // tile_b,)

    kernel = functools.partial(_mlp_kernel, act_dtype=act_dtype)

    def _call(single_buffer_weights):
        def w_spec(shape):
            # Weight/bias blocks never change -> single-buffer them to save
            # VMEM and pipeline bookkeeping (fallback to default if rejected).
            if single_buffer_weights:
                return pl.BlockSpec(shape, lambda i: (0, 0),
                                    pipeline_mode=pl.Buffered(1))
            return pl.BlockSpec(shape, lambda i: (0, 0))

        return pl.pallas_call(
            kernel,
            out_shape=jax.ShapeDtypeStruct((b_pad, op), out_dtype),
            grid_spec=pltpu.PrefetchScalarGridSpec(
                num_scalar_prefetch=0,
                grid=grid,
                in_specs=[
                    # activations: new batch tile every step (pipelined DMA)
                    pl.BlockSpec((tile_b, d_in), lambda i: (i, 0)),
                    # weights / biases: VMEM-resident across all steps
                    w_spec((d_in, h1p)),
                    w_spec((1, h1p)),
                    w_spec((h1p, h2p)),
                    w_spec((1, h2p)),
                    w_spec((h2p, op)),
                    w_spec((1, op)),
                ],
                out_specs=pl.BlockSpec((tile_b, op), lambda i: (i, 0)),
            ),
            compiler_params=pltpu.CompilerParams(
                # batch tiles are independent -> shard across both TCs on v7x
                dimension_semantics=("parallel",),
            ),
        )(z, w0_t, b0_r, w1_t, b1_r, w2_t, b2_r)

    try:
        out = _call(True)
    except Exception:
        # pipeline_mode=pl.Buffered(1) not supported on this JAX build:
        # fall back to default double-buffering (correctness unaffected).
        out = _call(False)

    return out[:B, :out_dim]


def mlp_forward(x, u, params, *, compute_dtype=jnp.bfloat16, tile_b=None,
                out_dtype=None, bf16_vector_math=None):
    """Convenience wrapper: prep params then run (prefer prepare_mlp_params +
    mlp_forward_prepped for repeated calls)."""
    prepped = prepare_mlp_params(params, compute_dtype=compute_dtype)
    return mlp_forward_prepped(x, u, prepped, tile_b=tile_b,
                               out_dtype=out_dtype,
                               bf16_vector_math=bf16_vector_math)


# ---------------------------------------------------------------------------
# reference + test harness
# ---------------------------------------------------------------------------
def _init_linear(key, in_dim, out_dim):
    """torch.nn.Linear default init: U(-1/sqrt(fan_in), 1/sqrt(fan_in))."""
    kw, kb = jax.random.split(key)
    bound = 1.0 / jnp.sqrt(jnp.float32(in_dim))
    w = jax.random.uniform(kw, (out_dim, in_dim), jnp.float32, -bound, bound)
    b = jax.random.uniform(kb, (out_dim,), jnp.float32, -bound, bound)
    return w, b


def _reference_forward(x, u, params):
    (w0, b0), (w1, b1), (w2, b2) = params
    hp = jax.lax.Precision.HIGHEST
    z = jnp.concatenate([x, u], axis=-1)
    h1 = jnp.tanh(jnp.dot(z, w0.T, precision=hp) + b0)
    h2 = jnp.tanh(jnp.dot(h1, w1.T, precision=hp) + b1)
    return jnp.dot(h2, w2.T, precision=hp) + b2


if __name__ == "__main__":
    # Module hyper-params (defaults from MLP.__init__)
    act_dim, obs_dim = 1, 2
    hidden1, hidden2, out_dim = 200, 200, 4

    key = jax.random.PRNGKey(0)
    kx, ku, k0, k1, k2, kx2, ku2 = jax.random.split(key, 7)

    params = (
        _init_linear(k0, obs_dim + act_dim, hidden1),
        _init_linear(k1, hidden1, hidden2),
        _init_linear(k2, hidden2, out_dim),
    )

    # one-time parameter prep (hoisted out of the hot loop)
    prepped_bf16 = prepare_mlp_params(params)                      # bf16 MXU
    prepped_f32 = prepare_mlp_params(params, compute_dtype=jnp.float32)

    # --- small batch (single tile), default bf16 MXU path -------------------
    batch = 8
    x = jax.random.normal(kx, (batch, obs_dim), jnp.float32)
    u = jax.random.normal(ku, (batch, act_dim), jnp.float32)
    y_ref = _reference_forward(x, u, params)

    y = jax.block_until_ready(mlp_forward_prepped(x, u, prepped_bf16))
    assert y.shape == (batch, out_dim)
    assert y.dtype == x.dtype
    assert jnp.allclose(y, y_ref, atol=1e-1, rtol=1e-1), "bf16 path mismatch"

    # --- f32 MXU-operand path (tighter tolerance) ----------------------------
    y_f32 = jax.block_until_ready(mlp_forward_prepped(x, u, prepped_f32))
    assert y_f32.shape == (batch, out_dim)
    assert jnp.allclose(y_f32, y_ref, atol=2e-2, rtol=2e-2), "f32 path mismatch"

    # --- larger, non-aligned batch: exercises grid + batch padding ----------
    batch2 = 300
    x2 = jax.random.normal(kx2, (batch2, obs_dim), jnp.float32)
    u2 = jax.random.normal(ku2, (batch2, act_dim), jnp.float32)
    y2 = jax.block_until_ready(
        mlp_forward_prepped(x2, u2, prepped_bf16, tile_b=128))
    y2_ref = _reference_forward(x2, u2, params)
    assert y2.shape == (batch2, out_dim)
    assert jnp.allclose(y2, y2_ref, atol=1e-1, rtol=1e-1), "gridded mismatch"

    print("KERNEL_OK")
</pallas_src>

<mosaic_0001>
module attributes {stable_mosaic.version = 11 : i64} {
  func.func @_mlp_kernel(%arg0: i32, %arg1: memref<8x3xf32, #tpu.memory_space<vmem>>, %arg2: memref<3x256xf32, #tpu.memory_space<vmem>>, %arg3: memref<1x256xf32, #tpu.memory_space<vmem>>, %arg4: memref<256x256xbf16, #tpu.memory_space<vmem>>, %arg5: memref<1x256xf32, #tpu.memory_space<vmem>>, %arg6: memref<256x128xbf16, #tpu.memory_space<vmem>>, %arg7: memref<1x128xf32, #tpu.memory_space<vmem>>, %arg8: memref<8x128xf32, #tpu.memory_space<vmem>>) attributes {dimension_semantics = [#tpu.dimension_semantics<parallel>], iteration_bounds = array<i64: 1>, scalar_prefetch = 0 : i64, scratch_operands = 0 : i64, tpu.core_type = #tpu.core_type<tc>, window_params = [{transform_indices = @transform_0, window_bounds = array<i64: 8, 3>}, {pipeline_mode = #tpu.pipeline_mode<synchronous>, transform_indices = @transform_1, window_bounds = array<i64: 3, 256>}, {pipeline_mode = #tpu.pipeline_mode<synchronous>, transform_indices = @transform_2, window_bounds = array<i64: 1, 256>}, {pipeline_mode = #tpu.pipeline_mode<synchronous>, transform_indices = @transform_3, window_bounds = array<i64: 256, 256>}, {pipeline_mode = #tpu.pipeline_mode<synchronous>, transform_indices = @transform_4, window_bounds = array<i64: 1, 256>}, {pipeline_mode = #tpu.pipeline_mode<synchronous>, transform_indices = @transform_5, window_bounds = array<i64: 256, 128>}, {pipeline_mode = #tpu.pipeline_mode<synchronous>, transform_indices = @transform_6, window_bounds = array<i64: 1, 128>}, {transform_indices = @transform_7, window_bounds = array<i64: 8, 128>}]} {
    %c0 = arith.constant 0 : index
    %c0_0 = arith.constant 0 : index
    %0 = vector.load %arg1[%c0, %c0_0] : memref<8x3xf32, #tpu.memory_space<vmem>>, vector<8x3xf32>
    %c0_1 = arith.constant 0 : index
    %c0_2 = arith.constant 0 : index
    %1 = vector.load %arg2[%c0_1, %c0_2] : memref<3x256xf32, #tpu.memory_space<vmem>>, vector<3x256xf32>
    %c0_3 = arith.constant 0 : index
    %c0_4 = arith.constant 0 : index
    %2 = vector.load %arg3[%c0_3, %c0_4] : memref<1x256xf32, #tpu.memory_space<vmem>>, vector<1x256xf32>
    %3 = vector.extract_strided_slice %0 {offsets = [0, 0], sizes = [8, 1], strides = [1, 1]} : vector<8x3xf32> to vector<8x1xf32>
    %4 = vector.extract_strided_slice %1 {offsets = [0, 0], sizes = [1, 256], strides = [1, 1]} : vector<3x256xf32> to vector<1x256xf32>
    %5 = vector.broadcast %3 : vector<8x1xf32> to vector<8x256xf32>
    %6 = vector.broadcast %4 : vector<1x256xf32> to vector<8x256xf32>
    %7 = arith.mulf %5, %6 : vector<8x256xf32>
    %8 = vector.broadcast %2 : vector<1x256xf32> to vector<8x256xf32>
    %9 = arith.addf %8, %7 : vector<8x256xf32>
    %10 = vector.extract_strided_slice %0 {offsets = [0, 1], sizes = [8, 1], strides = [1, 1]} : vector<8x3xf32> to vector<8x1xf32>
    %11 = vector.extract_strided_slice %1 {offsets = [1, 0], sizes = [1, 256], strides = [1, 1]} : vector<3x256xf32> to vector<1x256xf32>
    %12 = vector.broadcast %10 : vector<8x1xf32> to vector<8x256xf32>
    %13 = vector.broadcast %11 : vector<1x256xf32> to vector<8x256xf32>
    %14 = arith.mulf %12, %13 : vector<8x256xf32>
    %15 = arith.addf %9, %14 : vector<8x256xf32>
    %16 = vector.extract_strided_slice %0 {offsets = [0, 2], sizes = [8, 1], strides = [1, 1]} : vector<8x3xf32> to vector<8x1xf32>
    %17 = vector.extract_strided_slice %1 {offsets = [2, 0], sizes = [1, 256], strides = [1, 1]} : vector<3x256xf32> to vector<1x256xf32>
    %18 = vector.broadcast %16 : vector<8x1xf32> to vector<8x256xf32>
    %19 = vector.broadcast %17 : vector<1x256xf32> to vector<8x256xf32>
    %20 = arith.mulf %18, %19 : vector<8x256xf32>
    %21 = arith.addf %15, %20 : vector<8x256xf32>
    %22 = arith.truncf %21 : vector<8x256xf32> to vector<8x256xbf16>
    %23 = math.tanh %22 : vector<8x256xbf16>
    %c0_5 = arith.constant 0 : index
    %c0_6 = arith.constant 0 : index
    %24 = vector.load %arg4[%c0_5, %c0_6] : memref<256x256xbf16, #tpu.memory_space<vmem>>, vector<256x256xbf16>
    %cst = arith.constant dense<0.000000e+00> : vector<8x256xf32>
    %25 = tpu.matmul %23, %24, %cst {dimension_numbers = #tpu.dot_dimension_numbers<[1], [0], [0], [1], [0, 0, 1, 1], [], []>} : vector<8x256xbf16>, vector<256x256xbf16>, vector<8x256xf32> -> vector<8x256xf32>
    %c0_7 = arith.constant 0 : index
    %c0_8 = arith.constant 0 : index
    %26 = vector.load %arg5[%c0_7, %c0_8] : memref<1x256xf32, #tpu.memory_space<vmem>>, vector<1x256xf32>
    %27 = vector.broadcast %26 : vector<1x256xf32> to vector<8x256xf32>
    %28 = arith.addf %25, %27 : vector<8x256xf32>
    %29 = arith.truncf %28 : vector<8x256xf32> to vector<8x256xbf16>
    %30 = math.tanh %29 : vector<8x256xbf16>
    %c0_9 = arith.constant 0 : index
    %c0_10 = arith.constant 0 : index
    %31 = vector.load %arg6[%c0_9, %c0_10] : memref<256x128xbf16, #tpu.memory_space<vmem>>, vector<256x128xbf16>
    %cst_11 = arith.constant dense<0.000000e+00> : vector<8x128xf32>
    %32 = tpu.matmul %30, %31, %cst_11 {dimension_numbers = #tpu.dot_dimension_numbers<[1], [0], [0], [1], [0, 0, 1, 1], [], []>} : vector<8x256xbf16>, vector<256x128xbf16>, vector<8x128xf32> -> vector<8x128xf32>
    %c0_12 = arith.constant 0 : index
    %c0_13 = arith.constant 0 : index
    %33 = vector.load %arg7[%c0_12, %c0_13] : memref<1x128xf32, #tpu.memory_space<vmem>>, vector<1x128xf32>
    %34 = vector.broadcast %33 : vector<1x128xf32> to vector<8x128xf32>
    %35 = arith.addf %32, %34 : vector<8x128xf32>
    %c0_14 = arith.constant 0 : index
    %c0_15 = arith.constant 0 : index
    %36 = vector.load %arg8[%c0_14, %c0_15] : memref<8x128xf32, #tpu.memory_space<vmem>>, vector<8x128xf32>
    tpu.vector_store %arg8[%c0_14, %c0_15], %35 {strides = array<i32>} : memref<8x128xf32, #tpu.memory_space<vmem>>, vector<8x128xf32>,
    return
  }
  func.func @transform_0(%arg0: i32) -> (i32, i32) {
    %c0_i32 = arith.constant 0 : i32
    %c0_i32_0 = arith.constant 0 : i32
    return %arg0, %c0_i32 : i32, i32
  }
  func.func @transform_1(%arg0: i32) -> (i32, i32) {
    %c0_i32 = arith.constant 0 : i32
    %c0_i32_0 = arith.constant 0 : i32
    %c0_i32_1 = arith.constant 0 : i32
    return %c0_i32, %c0_i32_0 : i32, i32
  }
  func.func @transform_2(%arg0: i32) -> (i32, i32) {
    %c0_i32 = arith.constant 0 : i32
    %c0_i32_0 = arith.constant 0 : i32
    %c0_i32_1 = arith.constant 0 : i32
    return %c0_i32, %c0_i32_0 : i32, i32
  }
  func.func @transform_3(%arg0: i32) -> (i32, i32) {
    %c0_i32 = arith.constant 0 : i32
    %c0_i32_0 = arith.constant 0 : i32
    %c0_i32_1 = arith.constant 0 : i32
    return %c0_i32, %c0_i32_0 : i32, i32
  }
  func.func @transform_4(%arg0: i32) -> (i32, i32) {
    %c0_i32 = arith.constant 0 : i32
    %c0_i32_0 = arith.constant 0 : i32
    %c0_i32_1 = arith.constant 0 : i32
    return %c0_i32, %c0_i32_0 : i32, i32
  }
  func.func @transform_5(%arg0: i32) -> (i32, i32) {
    %c0_i32 = arith.constant 0 : i32
    %c0_i32_0 = arith.constant 0 : i32
    %c0_i32_1 = arith.constant 0 : i32
    return %c0_i32, %c0_i32_0 : i32, i32
  }
  func.func @transform_6(%arg0: i32) -> (i32, i32) {
    %c0_i32 = arith.constant 0 : i32
    %c0_i32_0 = arith.constant 0 : i32
    %c0_i32_1 = arith.constant 0 : i32
    return %c0_i32, %c0_i32_0 : i32, i32
  }
  func.func @transform_7(%arg0: i32) -> (i32, i32) {
    %c0_i32 = arith.constant 0 : i32
    %c0_i32_0 = arith.constant 0 : i32
    return %arg0, %c0_i32 : i32, i32
  }
}

module attributes {stable_mosaic.version = 11 : i64} {
  func.func @_mlp_kernel(%arg0: i32, %arg1: memref<8x3xf32, #tpu.memory_space<vmem>>, %arg2: memref<3x256xf32, #tpu.memory_space<vmem>>, %arg3: memref<1x256xf32, #tpu.memory_space<vmem>>, %arg4: memref<256x256xbf16, #tpu.memory_space<vmem>>, %arg5: memref<1x256xf32, #tpu.memory_space<vmem>>, %arg6: memref<256x128xbf16, #tpu.memory_space<vmem>>, %arg7: memref<1x128xf32, #tpu.memory_space<vmem>>, %arg8: memref<8x128xf32, #tpu.memory_space<vmem>>) attributes {dimension_semantics = [#tpu.dimension_semantics<parallel>], iteration_bounds = array<i64: 1>, scalar_prefetch = 0 : i64, scratch_operands = 0 : i64, tpu.core_type = #tpu.core_type<tc>, window_params = [{transform_indices = @transform_0, window_bounds = array<i64: 8, 3>}, {pipeline_mode = #tpu.pipeline_mode<synchronous>, transform_indices = @transform_1, window_bounds = array<i64: 3, 256>}, {pipeline_mode = #tpu.pipeline_mode<synchronous>, transform_indices = @transform_2, window_bounds = array<i64: 1, 256>}, {pipeline_mode = #tpu.pipeline_mode<synchronous>, transform_indices = @transform_3, window_bounds = array<i64: 256, 256>}, {pipeline_mode = #tpu.pipeline_mode<synchronous>, transform_indices = @transform_4, window_bounds = array<i64: 1, 256>}, {pipeline_mode = #tpu.pipeline_mode<synchronous>, transform_indices = @transform_5, window_bounds = array<i64: 256, 128>}, {pipeline_mode = #tpu.pipeline_mode<synchronous>, transform_indices = @transform_6, window_bounds = array<i64: 1, 128>}, {transform_indices = @transform_7, window_bounds = array<i64: 8, 128>}]} {
    %c0 = arith.constant 0 : index
    %c0_0 = arith.constant 0 : index
    %0 = vector.load %arg1[%c0, %c0_0] : memref<8x3xf32, #tpu.memory_space<vmem>>, vector<8x3xf32>
    %c0_1 = arith.constant 0 : index
    %c0_2 = arith.constant 0 : index
    %1 = vector.load %arg2[%c0_1, %c0_2] : memref<3x256xf32, #tpu.memory_space<vmem>>, vector<3x256xf32>
    %c0_3 = arith.constant 0 : index
    %c0_4 = arith.constant 0 : index
    %2 = vector.load %arg3[%c0_3, %c0_4] : memref<1x256xf32, #tpu.memory_space<vmem>>, vector<1x256xf32>
    %3 = vector.extract_strided_slice %0 {offsets = [0, 0], sizes = [8, 1], strides = [1, 1]} : vector<8x3xf32> to vector<8x1xf32>
    %4 = vector.extract_strided_slice %1 {offsets = [0, 0], sizes = [1, 256], strides = [1, 1]} : vector<3x256xf32> to vector<1x256xf32>
    %5 = vector.broadcast %3 : vector<8x1xf32> to vector<8x256xf32>
    %6 = vector.broadcast %4 : vector<1x256xf32> to vector<8x256xf32>
    %7 = arith.mulf %5, %6 : vector<8x256xf32>
    %8 = vector.broadcast %2 : vector<1x256xf32> to vector<8x256xf32>
    %9 = arith.addf %8, %7 : vector<8x256xf32>
    %10 = vector.extract_strided_slice %0 {offsets = [0, 1], sizes = [8, 1], strides = [1, 1]} : vector<8x3xf32> to vector<8x1xf32>
    %11 = vector.extract_strided_slice %1 {offsets = [1, 0], sizes = [1, 256], strides = [1, 1]} : vector<3x256xf32> to vector<1x256xf32>
    %12 = vector.broadcast %10 : vector<8x1xf32> to vector<8x256xf32>
    %13 = vector.broadcast %11 : vector<1x256xf32> to vector<8x256xf32>
    %14 = arith.mulf %12, %13 : vector<8x256xf32>
    %15 = arith.addf %9, %14 : vector<8x256xf32>
    %16 = vector.extract_strided_slice %0 {offsets = [0, 2], sizes = [8, 1], strides = [1, 1]} : vector<8x3xf32> to vector<8x1xf32>
    %17 = vector.extract_strided_slice %1 {offsets = [2, 0], sizes = [1, 256], strides = [1, 1]} : vector<3x256xf32> to vector<1x256xf32>
    %18 = vector.broadcast %16 : vector<8x1xf32> to vector<8x256xf32>
    %19 = vector.broadcast %17 : vector<1x256xf32> to vector<8x256xf32>
    %20 = arith.mulf %18, %19 : vector<8x256xf32>
    %21 = arith.addf %15, %20 : vector<8x256xf32>
    %22 = arith.truncf %21 : vector<8x256xf32> to vector<8x256xbf16>
    %23 = math.tanh %22 : vector<8x256xbf16>
    %c0_5 = arith.constant 0 : index
    %c0_6 = arith.constant 0 : index
    %24 = vector.load %arg4[%c0_5, %c0_6] : memref<256x256xbf16, #tpu.memory_space<vmem>>, vector<256x256xbf16>
    %cst = arith.constant dense<0.000000e+00> : vector<8x256xf32>
    %25 = tpu.matmul %23, %24, %cst {dimension_numbers = #tpu.dot_dimension_numbers<[1], [0], [0], [1], [0, 0, 1, 1], [], []>} : vector<8x256xbf16>, vector<256x256xbf16>, vector<8x256xf32> -> vector<8x256xf32>
    %c0_7 = arith.constant 0 : index
    %c0_8 = arith.constant 0 : index
    %26 = vector.load %arg5[%c0_7, %c0_8] : memref<1x256xf32, #tpu.memory_space<vmem>>, vector<1x256xf32>
    %27 = vector.broadcast %26 : vector<1x256xf32> to vector<8x256xf32>
    %28 = arith.addf %25, %27 : vector<8x256xf32>
    %29 = arith.truncf %28 : vector<8x256xf32> to vector<8x256xbf16>
    %30 = math.tanh %29 : vector<8x256xbf16>
    %c0_9 = arith.constant 0 : index
    %c0_10 = arith.constant 0 : index
    %31 = vector.load %arg6[%c0_9, %c0_10] : memref<256x128xbf16, #tpu.memory_space<vmem>>, vector<256x128xbf16>
    %cst_11 = arith.constant dense<0.000000e+00> : vector<8x128xf32>
    %32 = tpu.matmul %30, %31, %cst_11 {dimension_numbers = #tpu.dot_dimension_numbers<[1], [0], [0], [1], [0, 0, 1, 1], [], []>} : vector<8x256xbf16>, vector<256x128xbf16>, vector<8x128xf32> -> vector<8x128xf32>
    %c0_12 = arith.constant 0 : index
    %c0_13 = arith.constant 0 : index
    %33 = vector.load %arg7[%c0_12, %c0_13] : memref<1x128xf32, #tpu.memory_space<vmem>>, vector<1x128xf32>
    %34 = vector.broadcast %33 : vector<1x128xf32> to vector<8x128xf32>
    %35 = arith.addf %32, %34 : vector<8x128xf32>
    %c0_14 = arith.constant 0 : index
    %c0_15 = arith.constant 0 : index
    %36 = vector.load %arg8[%c0_14, %c0_15] : memref<8x128xf32, #tpu.memory_space<vmem>>, vector<8x128xf32>
    tpu.vector_store %arg8[%c0_14, %c0_15], %35 {strides = array<i32>} : memref<8x128xf32, #tpu.memory_space<vmem>>, vector<8x128xf32>,
    return
  }
  func.func @transform_0(%arg0: i32) -> (i32, i32) {
    %c0_i32 = arith.constant 0 : i32
    %c0_i32_0 = arith.constant 0 : i32
    return %arg0, %c0_i32 : i32, i32
  }
  func.func @transform_1(%arg0: i32) -> (i32, i32) {
    %c0_i32 = arith.constant 0 : i32
    %c0_i32_0 = arith.constant 0 : i32
    %c0_i32_1 = arith.constant 0 : i32
    return %c0_i32, %c0_i32_0 : i32, i32
  }
  func.func @transform_2(%arg0: i32) -> (i32, i32) {
    %c0_i32 = arith.constant 0 : i32
    %c0_i32_0 = arith.constant 0 : i32
    %c0_i32_1 = arith.constant 0 : i32
    return %c0_i32, %c0_i32_0 : i32, i32
  }
  func.func @transform_3(%arg0: i32) -> (i32, i32) {
    %c0_i32 = arith.constant 0 : i32
    %c0_i32_0 = arith.constant 0 : i32
    %c0_i32_1 = arith.constant 0 : i32
    return %c0_i32, %c0_i32_0 : i32, i32
  }
  func.func @transform_4(%arg0: i32) -> (i32, i32) {
    %c0_i32 = arith.constant 0 : i32
    %c0_i32_0 = arith.constant 0 : i32
    %c0_i32_1 = arith.constant 0 : i32
    return %c0_i32, %c0_i32_0 : i32, i32
  }
  func.func @transform_5(%arg0: i32) -> (i32, i32) {
    %c0_i32 = arith.constant 0 : i32
    %c0_i32_0 = arith.constant 0 : i32
    %c0_i32_1 = arith.constant 0 : i32
    return %c0_i32, %c0_i32_0 : i32, i32
  }
  func.func @transform_6(%arg0: i32) -> (i32, i32) {
    %c0_i32 = arith.constant 0 : i32
    %c0_i32_0 = arith.constant 0 : i32
    %c0_i32_1 = arith.constant 0 : i32
    return %c0_i32, %c0_i32_0 : i32, i32
  }
  func.func @transform_7(%arg0: i32) -> (i32, i32) {
    %c0_i32 = arith.constant 0 : i32
    %c0_i32_0 = arith.constant 0 : i32
    return %arg0, %c0_i32 : i32, i32
  }
}

</mosaic_0001>

<bundles_post_ra>
// kernel: tpu_custom_call.1
= control target key start
LH: loop header
LB: loop body
LE: loop exit
PB: predicated region body
PF: predicated region fallthrough
CT: control target
= control target key end

     0   :  { %12 = vsyncpa [#allocation3], 0  ;;  %s906_s0 = inlined_call_operand.vmem [shape: f32[8,3], index: 0, kind: input, shape index: {}]   ;;  %s907_s1 = inlined_call_operand.vmem [shape: f32[3,256], index: 1, kind: input, shape index: {}]   ;;  %s908_s2 = inlined_call_operand.vmem [shape: f32[1,256], index: 2, kind: input, shape index: {}]   ;;  %s909_s3 = inlined_call_operand.hbm [shape: bf16[256,256], index: 3, kind: input, shape index: {}]   ;;  %s910_s4 = inlined_call_operand.vmem [shape: f32[1,256], index: 4, kind: input, shape index: {}]   ;;  %s911_s5 = inlined_call_operand.hbm [shape: bf16[256,128], index: 5, kind: input, shape index: {}]   ;;  %s912_s6 = inlined_call_operand.vmem [shape: f32[1,128], index: 6, kind: input, shape index: {}]   ;;  %s913_s7 = inlined_call_operand.hbm [shape: f32[8,128], index: 7, kind: output, shape index: {}]  }
   0x1   :  { %13 = vsyncpa [#allocation6], 0 }
   0x2   :  { %14 = vsyncpa [#allocation4], 0  ;;  %s818_s24 = smov [#allocation2]  }
   0x3   :  { %s26_s25 = sshll.u32 %s818_s24, 4  ;;  %s27_s25 = int_to_ptr.vmem [resolvable:$true] %s26_s25 }
   0x4   :  { %s760_s26 = scalar_lea.vmem %s27_s25, 4096  ;;  %p765_p1 = scmp.lt.s32.totalorder %s27_s25, %s27_s25 }
   0x5   :  { %p761_p0 = scmp.ne.s32.totalorder %s27_s25, %s760_s26  ;;  %p766_p2 = scmp.lt.s32.totalorder %s760_s26, %s760_s26 }
   0x7   :  { %p767_p3 = por %p766_p2, %p765_p1 }
   0x9   :  { %p768_p4 = pnand %p767_p3, %p761_p0 }
   0xb   :  { %771 = shalt.err (!%p768_p4)
}
   0xc   :  { %s819_s27 = smov 128   ;;  %s820_s28 = smov 8  }
   0xd   :  { %32 = dma.hbm_to_vmem [thread:$0]  %s909_s3, 4096, %s27_s25, [#allocation3], %s819_s27, %s819_s27, %s820_s28  }
   0xe   :  { %s821_s8 = smov [#allocation5]  }
   0xf   :  { %s40_s9 = sshll.u32 %s821_s8, 4  ;;  %s41_s9 = int_to_ptr.vmem [resolvable:$true] %s40_s9 }
  0x10   :  { %s780_s10 = scalar_lea.vmem %s41_s9, 2048  ;;  %p785_p6 = scmp.lt.s32.totalorder %s41_s9, %s41_s9 }
  0x11   :  { %p781_p5 = scmp.ne.s32.totalorder %s41_s9, %s780_s10  ;;  %p786_p7 = scmp.lt.s32.totalorder %s780_s10, %s780_s10 }
  0x13   :  { %p787_p8 = por %p786_p7, %p785_p6 }
  0x15   :  { %p788_p9 = pnand %p787_p8, %p781_p5 }
  0x17   :  { %791 = shalt.err (!%p788_p9)
}
  0x18   :  { %s822_s11 = smov 64   ;;  %s823_s12 = smov 4  }
  0x19   :  { %46 = dma.hbm_to_vmem [thread:$0]  %s911_s5, 2048, %s41_s9, [#allocation6], %s822_s11, %s822_s11, %s823_s12  }
  0x1a   :  { %812 = dma.done.wait [#allocation3], 4096  }
  0x1b   :  { %813 = vsyncadd [#allocation3], 4294963200 }
  0x1c   :  { %814 = dma.done.wait [#allocation6], 2048  }
  0x1d   :  { %815 = vsyncadd [#allocation6], 4294965248  ;;  %v824_v0 = vmov 0   ;;  %v825_v1 = vmov 2   ;;  %v56_v2 = vld [vmem:[%s906_s0] sm:$0xff]  ;;  %v826_v7 = vmov 1   ;;  %v65_v41 = vlaneseq }
  0x1e   :  { %676 = vset.pattern.permute.xlu0 %v824_v0  ;;  %678 = vset.pattern.permute.xlu1 %v825_v1  ;;  %v680_v3 = vld [vmem:[#allocation2 + $0x74] ss:$8 sps:$4 sm:$0xff]   ;;  %v682_v4 = vld [vmem:[#allocation2 + $0x70] ss:$8 sps:$4 sm:$0xff]   ;;  %v683_v5 = vld [vmem:[#allocation2 + $0x64] ss:$8 sps:$4 sm:$0xff]  }
  0x1f   :  { %61 = vperm.xlu0 %676, %v56_v2   ;;  %125 = vperm.xlu1 %678, %v56_v2   ;;  %v685_v6 = vld [vmem:[#allocation2 + $0x60] ss:$8 sps:$4 sm:$0xff]   ;;  %v686_v8 = vld [vmem:[#allocation2 + $0x54] ss:$8 sps:$4 sm:$0xff]   ;;  %v688_v9 = vld [vmem:[#allocation2 + $0x50] ss:$8 sps:$4 sm:$0xff]  }
  0x20   :  { %358 = vmatprep.subr.bf16.mxu0 %v680_v3  ;;  %v689_v10 = vld [vmem:[#allocation2 + $0x44] ss:$8 sps:$4 sm:$0xff]   ;;  %v691_v11 = vld [vmem:[#allocation2 + $0x40] ss:$8 sps:$4 sm:$0xff]   ;;  %v692_v12 = vld [vmem:[#allocation2 + $0x34] ss:$8 sps:$4 sm:$0xff]  }
  0x21   :  { %359 = vmatpush1.bf16.msra.mxu0 %v682_v4  ;;  %v694_v13 = vld [vmem:[#allocation2 + $0x30] ss:$8 sps:$4 sm:$0xff]   ;;  %v695_v14 = vld [vmem:[#allocation2 + $0x24] ss:$8 sps:$4 sm:$0xff]   ;;  %v697_v15 = vld [vmem:[#allocation2 + $0x20] ss:$8 sps:$4 sm:$0xff]  }
  0x22   :  { %360 = vmatprep.subr.bf16.mxu0 %v683_v5  ;;  %v698_v16 = vld [vmem:[#allocation2 + $0x14] ss:$8 sps:$4 sm:$0xff]   ;;  %v700_v17 = vld [vmem:[#allocation2 + $0x10] ss:$8 sps:$4 sm:$0xff]   ;;  %v701_v18 = vld [vmem:[#allocation2 + $0x4] ss:$8 sps:$4 sm:$0xff]  }
  0x23   :  { %677 = vset.pattern.permute.xlu0 %v826_v7  ;;  %v728_v19 = vld [vmem:[#allocation5 + $0x78] sm:$0xff]   ;;  %v730_v21 = vld [vmem:[#allocation5 + $0x70] sm:$0xff]   ;;  %v703_v22 = vld [vmem:[#allocation2] ss:$8 sps:$4 sm:$0xff]   ;;  %v66_v42 = vshrl.u32 %v65_v41, 7  ;;  %s827_s19 = smov [#allocation7]  }
  0x24   :  { %99 = vperm.xlu0 %677, %v56_v2   ;;  %v729_v20 = vld [vmem:[#allocation5 + $0x38] sm:$0xff]   ;;  %v731_v24 = vld [vmem:[#allocation5 + $0x30] sm:$0xff]   ;;  %644 = vmatprep.subr.bf16.mxu1 %v728_v19  ;;  %v732_v25 = vld [vmem:[#allocation5 + $0x68] sm:$0xff]   ;;  %s585_s20 = sshll.u32 %s827_s19, 4  ;;  %s586_s20 = int_to_ptr.vmem [resolvable:$true] %s585_s20 }
  0x25   :  { %361 = vmatpush1.bf16.msra.mxu0 %v685_v6  ;;  %v704_v23 = vld [vmem:[#allocation2 + $0xf4] ss:$8 sps:$4 sm:$0xff]   ;;  %v706_v26 = vld [vmem:[#allocation2 + $0xf0] ss:$8 sps:$4 sm:$0xff]   ;;  %645 = vmatpush3.bf16.msra.mxu1 %v729_v20  ;;  %v707_v27 = vld [vmem:[#allocation2 + $0xe4] ss:$8 sps:$4 sm:$0xff]   ;;  %p797_p11 = scmp.lt.s32.totalorder %s586_s20, %s586_s20 }
  0x26   :  { %362 = vmatprep.subr.bf16.mxu0 %v686_v8  ;;  %646 = vmatprep.subr.bf16.mxu1 %v730_v21  ;;  %v709_v28 = vld [vmem:[#allocation2 + $0xe0] ss:$8 sps:$4 sm:$0xff]   ;;  %v710_v29 = vld [vmem:[#allocation2 + $0xd4] ss:$8 sps:$4 sm:$0xff]   ;;  %v712_v30 = vld [vmem:[#allocation2 + $0xd0] ss:$8 sps:$4 sm:$0xff]  }
  0x27   :  { %v713_v31 = vld [vmem:[#allocation2 + $0xc4] ss:$8 sps:$4 sm:$0xff]   ;;  %v715_v32 = vld [vmem:[#allocation2 + $0xc0] ss:$8 sps:$4 sm:$0xff]   ;;  %v716_v33 = vld [vmem:[#allocation2 + $0xb4] ss:$8 sps:$4 sm:$0xff]  }
  0x28   :  { %679 = vset.pattern.permute.xlu0 %v825_v1  ;;  %v718_v34 = vld [vmem:[#allocation2 + $0xb0] ss:$8 sps:$4 sm:$0xff]   ;;  %v719_v35 = vld [vmem:[#allocation2 + $0xa4] ss:$8 sps:$4 sm:$0xff]   ;;  %v721_v36 = vld [vmem:[#allocation2 + $0xa0] ss:$8 sps:$4 sm:$0xff]  }
  0x29   :  { %363 = vmatpush1.bf16.msra.mxu0 %v688_v9  ;;  %647 = vmatpush3.bf16.msra.mxu1 %v731_v24  ;;  %v722_v37 = vld [vmem:[#allocation2 + $0x94] ss:$8 sps:$4 sm:$0xff]   ;;  %v724_v38 = vld [vmem:[#allocation2 + $0x90] ss:$8 sps:$4 sm:$0xff]   ;;  %v725_v39 = vld [vmem:[#allocation2 + $0x84] ss:$8 sps:$4 sm:$0xff]  }
  0x2a   :  { %364 = vmatprep.subr.bf16.mxu0 %v689_v10  ;;  %648 = vmatprep.subr.bf16.mxu1 %v732_v25  ;;  %v727_v40 = vld [vmem:[#allocation2 + $0x80] ss:$8 sps:$4 sm:$0xff]   ;;  %v877_v43 = vsub.s32 0, %v66_v42  ;;  %v71_v44 = vsub.s32 4, %v66_v42  ;;  %v130_v46 = vsub.s32 2, %v66_v42  ;;  %v134_v47 = vsub.s32 6, %v66_v42 }
  0x2b   :  { %v57_v45 = vld [vmem:[%s907_s1] sm:$0x77]  ;;  %v883_v50 = vsub.s32 1, %v66_v42  ;;  %v108_v51 = vsub.s32 5, %v66_v42  ;;  %v733_v20 = vld [vmem:[#allocation5 + $0x28] sm:$0xff]   ;;  %v737_v24 = vld [vmem:[#allocation5 + $0x18] sm:$0xff]  }
  0x2c   :  { %v68_v48 = vrot.slane %v57_v45, %v877_v43  ;;  %v72_v49 = vrot.slane %v57_v45, %v71_v44  ;;  %v131_v52 = vrot.slane %v57_v45, %v130_v46  ;;  %v135_v53 = vrot.slane %v57_v45, %v134_v47  ;;  %v58_v54 = vld [vmem:[%s908_s2] sm:$0x3]  ;;  %v738_v25 = vld [vmem:[#allocation5 + $0x50] sm:$0xff]   ;;  %s792_s21 = scalar_lea.vmem %s586_s20, 128 }
  0x2d   :  { %365 = vmatpush1.bf16.msra.mxu0 %v691_v11  ;;  %v105_v57 = vrot.slane %v57_v45, %v883_v50  ;;  %v109_v58 = vrot.slane %v57_v45, %v108_v51  ;;  %v89_v60 = vrot.slane %v58_v54, %v877_v43  ;;  %v93_v61 = vrot.slane %v58_v54, %v883_v50  ;;  %v734_v21 = vld [vmem:[#allocation5 + $0x60] sm:$0xff]   ;;  %p793_p10 = scmp.ne.s32.totalorder %s586_s20, %s792_s21  ;;  %p798_p12 = scmp.lt.s32.totalorder %s792_s21, %s792_s21 }
  0x2e   :  { %366 = vmatprep.subr.bf16.mxu0 %v692_v12  ;;  %v78_v55 = vrot.slane %v68_v48, %v877_v43  ;;  %v82_v56 = vrot.slane %v72_v49, %v877_v43  ;;  %v141_v62 = vrot.slane %v131_v52, %v130_v46  ;;  %v145_v63 = vrot.slane %v135_v53, %v130_v46 }
  0x2f   :  { %v115_v2 = vrot.slane %v105_v57, %v883_v50  ;;  %v119_v3 = vrot.slane %v109_v58, %v883_v50  ;;  %649 = vmatpush3.bf16.msra.mxu1 %v733_v20  ;;  %p799_p13 = por %p798_p12, %p797_p11 }
  0x30   :  { %650 = vmatprep.subr.bf16.mxu1 %v734_v21 }
  0x31   :  { %367 = vmatpush1.bf16.msra.mxu0 %v694_v13  ;;  %p800_p0 = pnand %p799_p13, %p793_p10 }
  0x32   :  { %368 = vmatprep.subr.bf16.mxu0 %v695_v14 }
  0x35   :  { %369 = vmatpush1.bf16.msra.mxu0 %v697_v15 }
  0x36   :  { %370 = vmatprep.subr.bf16.mxu0 %v698_v16 }
  0x39   :  { %371 = vmatpush1.bf16.msra.mxu0 %v700_v17 }
  0x3a   :  { %372 = vmatprep.subr.bf16.mxu0 %v701_v18 }
  0x3d   :  { %373 = vmatpush1.bf16.msra.mxu0 %v703_v22  ;;  %v735_v22 = vld [vmem:[#allocation5 + $0x20] sm:$0xff]  }
  0x3e   :  { %374 = vmatprep.subr.bf16.mxu0 %v704_v23  ;;  %651 = vmatpush3.bf16.msra.mxu1 %v735_v22  ;;  %v736_v23 = vld [vmem:[#allocation5 + $0x58] sm:$0xff]  }
  0x3f   :  { %652 = vmatprep.subr.bf16.mxu1 %v736_v23 }
  0x41   :  { %375 = vmatpush2.bf16.msra.mxu0 %v706_v26  ;;  %v739_v26 = vld [vmem:[#allocation5 + $0x10] sm:$0xff]  }
  0x42   :  { %376 = vmatprep.subr.bf16.mxu0 %v707_v27  ;;  %653 = vmatpush3.bf16.msra.mxu1 %v737_v24  ;;  %v740_v27 = vld [vmem:[#allocation5 + $0x48] sm:$0xff]  }
  0x43   :  { %654 = vmatprep.subr.bf16.mxu1 %v738_v25 }
  0x45   :  { %377 = vmatpush2.bf16.msra.mxu0 %v709_v28  ;;  %v741_v28 = vld [vmem:[#allocation5 + $0x8] sm:$0xff]  }
  0x46   :  { %378 = vmatprep.subr.bf16.mxu0 %v710_v29  ;;  %655 = vmatpush3.bf16.msra.mxu1 %v739_v26  ;;  %v742_v29 = vld [vmem:[#allocation5 + $0x40] sm:$0xff]  }
  0x47   :  { %656 = vmatprep.subr.bf16.mxu1 %v740_v27 }
  0x49   :  { %379 = vmatpush2.bf16.msra.mxu0 %v712_v30  ;;  %v743_v30 = vld [vmem:[#allocation5] sm:$0xff]  }
  0x4a   :  { %380 = vmatprep.subr.bf16.mxu0 %v713_v31  ;;  %657 = vmatpush3.bf16.msra.mxu1 %v741_v28  ;;  %v186_v31 = vld [vmem:[%s910_s4] sm:$0x3] }
  0x4b   :  { %658 = vmatprep.subr.bf16.mxu1 %v742_v29 }
  0x4d   :  { %381 = vmatpush2.bf16.msra.mxu0 %v715_v32  ;;  %v191_v32 = vrot.slane %v186_v31, %v877_v43  ;;  %v627_v43 = vld [vmem:[%s912_s6] ss:$0 sm:$0xff] }
  0x4e   :  { %382 = vmatprep.subr.bf16.mxu0 %v716_v33  ;;  %659 = vmatpush3.bf16.msra.mxu1 %v743_v30  ;;  %v195_v33 = vrot.slane %v186_v31, %v883_v50 }
  0x51   :  { %383 = vmatpush2.bf16.msra.mxu0 %v718_v34 }
  0x52   :  { %384 = vmatprep.subr.bf16.mxu0 %v719_v35 }
  0x55   :  { %385 = vmatpush2.bf16.msra.mxu0 %v721_v36 }
  0x56   :  { %386 = vmatprep.subr.bf16.mxu0 %v722_v37 }
  0x59   :  { %387 = vmatpush2.bf16.msra.mxu0 %v724_v38 }
  0x5a   :  { %388 = vmatprep.subr.bf16.mxu0 %v725_v39 }
  0x5d   :  { %389 = vmatpush2.bf16.msra.mxu0 %v727_v40 }
  0x9a   :  { %v62_v59 = vpop.permute.xlu0 %61  ;;  %v126_v4 = vpop.permute.xlu1 %125 }
  0x9b   :  { %v83_v0 = vmul.f32 %v78_v55, %v62_v59  ;;  %v84_v1 = vmul.f32 %v82_v56, %v62_v59  ;;  %v146_v6 = vmul.f32 %v141_v62, %v126_v4  ;;  %v147_v7 = vmul.f32 %v145_v63, %v126_v4 }
  0x9d   :  { %v96_v8 = vadd.f32 %v89_v60, %v83_v0  ;;  %v97_v9 = vadd.f32 %v93_v61, %v84_v1 }
  0x9f   :  { %v100_v5 = vpop.permute.xlu0 %99 }
  0xa0   :  { %v120_v10 = vmul.f32 %v115_v2, %v100_v5  ;;  %v121_v11 = vmul.f32 %v119_v3, %v100_v5 }
  0xa2   :  { %v122_v12 = vadd.f32 %v120_v10, %v96_v8  ;;  %v123_v13 = vadd.f32 %v121_v11, %v97_v9 }
  0xa4   :  { %v148_v14 = vadd.f32 %v146_v6, %v122_v12  ;;  %v149_v15 = vadd.f32 %v147_v7, %v123_v13 }
  0xa6   :  { %v150_v16 = vpack.c.bf16 %v148_v14, %v148_v14  ;;  %v151_v17 = vpack.c.bf16 %v149_v15, %v149_v15 }
  0xa8   :  { %744 = vtanh.bf16 %v150_v16 }
  0xa9   :  { %746 = vtanh.bf16 %v151_v17 }
  0xb6   :  { %v745_v18 = vpop.eup %744 }
  0xb7   :  { %v747_v19 = vpop.eup %746 }
  0xb8   :  { %390 = vmatprep.mubr.bf16.mxu0 %v747_v19 }
  0xb9   :  { %391 = vmatmul.mubr.bf16.vlgmr.msra.gmra.mxu0 %v745_v18 }
 0x179   :  { %v392_v34 = vpop.f32.mrf.mxu0 }
 0x17a   :  { %v393_v35 = vadd.f32 %v392_v34, %v191_v32 }
 0x17b   :  { %v394_v36 = vpop.f32.mrf.mxu0 }
 0x17c   :  { %v395_v37 = vadd.f32 %v394_v36, %v195_v33  ;;  %v399_v38 = vpack.c.bf16 %v393_v35, %v393_v35 }
 0x17d   :  { %v396_v39 = vpop.f32.mrf.mxu0 }
 0x17e   :  { %v400_v40 = vpack.c.bf16 %v395_v37, %v395_v37 }
 0x17f   :  { %v397_v41 = vpop.f32.mrf.mxu0 }
 0x180   :  { %748 = vtanh.bf16 %v400_v40 }
 0x181   :  { %750 = vtanh.bf16 %v399_v38 }
 0x18e   :  { %v749_v42 = vpop.eup %748 }
 0x18f   :  { %v751_v44 = vpop.eup %750  ;;  %570 = vmatprep.mubr.bf16.mxu1 %v749_v42 }
 0x190   :  { %571 = vmatmul.mubr.bf16.vlgmr.msra.gmra.mxu1 %v751_v44 }
 0x250   :  { %v660_v45 = vpop.f32.mrf.mxu1 }
 0x252   :  { %v661_v46 = vpop.f32.mrf.mxu1 }
 0x253   :  { %v662_v47 = vadd.f32 %v661_v46, %v660_v45 }
 0x254   :  { %v663_v48 = vpop.f32.mrf.mxu1 }
 0x255   :  { %v573_v49 = vadd.f32 %v662_v47, %v627_v43 }
 0x256   :  { %v664_v50 = vpop.f32.mrf.mxu1 }
 0x257   :  { %578 = vst [vmem:[#allocation7] sm:$0xff] %v573_v49 }
 0x258   :  { %803 = shalt.err (!%p800_p0)
}
 0x259   :  { %588 = dma.vmem_to_hbm [thread:$0]  %s586_s20, 128, %s913_s7, [#allocation4]  }
 0x25a   :  { %816 = dma.done.wait [#allocation4], 128  }
 0x25b   :  { %817 = vsyncadd [#allocation4], 4294967168 }
 0x25c   :  { %592 = vsyncpa [#allocation3], 1 }
 0x25d   :  { %593 = vsyncpa [#allocation6], 1 }
 0x25e   :  { %594 = vsyncpa [#allocation4], 1 }

// kernel: tpu_custom_call.1
= control target key start
LH: loop header
LB: loop body
LE: loop exit
PB: predicated region body
PF: predicated region fallthrough
CT: control target
= control target key end

     0   :  { %12 = vsyncpa [#allocation3], 0  ;;  %s906_s0 = inlined_call_operand.vmem [shape: f32[8,3], index: 0, kind: input, shape index: {}]   ;;  %s907_s1 = inlined_call_operand.vmem [shape: f32[3,256], index: 1, kind: input, shape index: {}]   ;;  %s908_s2 = inlined_call_operand.vmem [shape: f32[1,256], index: 2, kind: input, shape index: {}]   ;;  %s909_s3 = inlined_call_operand.hbm [shape: bf16[256,256], index: 3, kind: input, shape index: {}]   ;;  %s910_s4 = inlined_call_operand.vmem [shape: f32[1,256], index: 4, kind: input, shape index: {}]   ;;  %s911_s5 = inlined_call_operand.hbm [shape: bf16[256,128], index: 5, kind: input, shape index: {}]   ;;  %s912_s6 = inlined_call_operand.vmem [shape: f32[1,128], index: 6, kind: input, shape index: {}]   ;;  %s913_s7 = inlined_call_operand.hbm [shape: f32[8,128], index: 7, kind: output, shape index: {}]  }
   0x1   :  { %13 = vsyncpa [#allocation6], 0 }
   0x2   :  { %14 = vsyncpa [#allocation4], 0  ;;  %s818_s24 = smov [#allocation2]  }
   0x3   :  { %s26_s25 = sshll.u32 %s818_s24, 4  ;;  %s27_s25 = int_to_ptr.vmem [resolvable:$true] %s26_s25 }
   0x4   :  { %s760_s26 = scalar_lea.vmem %s27_s25, 4096  ;;  %p765_p1 = scmp.lt.s32.totalorder %s27_s25, %s27_s25 }
   0x5   :  { %p761_p0 = scmp.ne.s32.totalorder %s27_s25, %s760_s26  ;;  %p766_p2 = scmp.lt.s32.totalorder %s760_s26, %s760_s26 }
   0x7   :  { %p767_p3 = por %p766_p2, %p765_p1 }
   0x9   :  { %p768_p4 = pnand %p767_p3, %p761_p0 }
   0xb   :  { %771 = shalt.err (!%p768_p4)
}
   0xc   :  { %s819_s27 = smov 128   ;;  %s820_s28 = smov 8  }
   0xd   :  { %32 = dma.hbm_to_vmem [thread:$0]  %s909_s3, 4096, %s27_s25, [#allocation3], %s819_s27, %s819_s27, %s820_s28  }
   0xe   :  { %s821_s8 = smov [#allocation5]  }
   0xf   :  { %s40_s9 = sshll.u32 %s821_s8, 4  ;;  %s41_s9 = int_to_ptr.vmem [resolvable:$true] %s40_s9 }
  0x10   :  { %s780_s10 = scalar_lea.vmem %s41_s9, 2048  ;;  %p785_p6 = scmp.lt.s32.totalorder %s41_s9, %s41_s9 }
  0x11   :  { %p781_p5 = scmp.ne.s32.totalorder %s41_s9, %s780_s10  ;;  %p786_p7 = scmp.lt.s32.totalorder %s780_s10, %s780_s10 }
  0x13   :  { %p787_p8 = por %p786_p7, %p785_p6 }
  0x15   :  { %p788_p9 = pnand %p787_p8, %p781_p5 }
  0x17   :  { %791 = shalt.err (!%p788_p9)
}
  0x18   :  { %s822_s11 = smov 64   ;;  %s823_s12 = smov 4  }
  0x19   :  { %46 = dma.hbm_to_vmem [thread:$0]  %s911_s5, 2048, %s41_s9, [#allocation6], %s822_s11, %s822_s11, %s823_s12  }
  0x1a   :  { %812 = dma.done.wait [#allocation3], 4096  }
  0x1b   :  { %813 = vsyncadd [#allocation3], 4294963200 }
  0x1c   :  { %814 = dma.done.wait [#allocation6], 2048  }
  0x1d   :  { %815 = vsyncadd [#allocation6], 4294965248  ;;  %v824_v0 = vmov 0   ;;  %v825_v1 = vmov 2   ;;  %v56_v2 = vld [vmem:[%s906_s0] sm:$0xff]  ;;  %v826_v7 = vmov 1   ;;  %v65_v41 = vlaneseq }
  0x1e   :  { %676 = vset.pattern.permute.xlu0 %v824_v0  ;;  %678 = vset.pattern.permute.xlu1 %v825_v1  ;;  %v680_v3 = vld [vmem:[#allocation2 + $0x74] ss:$8 sps:$4 sm:$0xff]   ;;  %v682_v4 = vld [vmem:[#allocation2 + $0x70] ss:$8 sps:$4 sm:$0xff]   ;;  %v683_v5 = vld [vmem:[#allocation2 + $0x64] ss:$8 sps:$4 sm:$0xff]  }
  0x1f   :  { %61 = vperm.xlu0 %676, %v56_v2   ;;  %125 = vperm.xlu1 %678, %v56_v2   ;;  %v685_v6 = vld [vmem:[#allocation2 + $0x60] ss:$8 sps:$4 sm:$0xff]   ;;  %v686_v8 = vld [vmem:[#allocation2 + $0x54] ss:$8 sps:$4 sm:$0xff]   ;;  %v688_v9 = vld [vmem:[#allocation2 + $0x50] ss:$8 sps:$4 sm:$0xff]  }
  0x20   :  { %358 = vmatprep.subr.bf16.mxu0 %v680_v3  ;;  %v689_v10 = vld [vmem:[#allocation2 + $0x44] ss:$8 sps:$4 sm:$0xff]   ;;  %v691_v11 = vld [vmem:[#allocation2 + $0x40] ss:$8 sps:$4 sm:$0xff]   ;;  %v692_v12 = vld [vmem:[#allocation2 + $0x34] ss:$8 sps:$4 sm:$0xff]  }
  0x21   :  { %359 = vmatpush1.bf16.msra.mxu0 %v682_v4  ;;  %v694_v13 = vld [vmem:[#allocation2 + $0x30] ss:$8 sps:$4 sm:$0xff]   ;;  %v695_v14 = vld [vmem:[#allocation2 + $0x24] ss:$8 sps:$4 sm:$0xff]   ;;  %v697_v15 = vld [vmem:[#allocation2 + $0x20] ss:$8 sps:$4 sm:$0xff]  }
  0x22   :  { %360 = vmatprep.subr.bf16.mxu0 %v683_v5  ;;  %v698_v16 = vld [vmem:[#allocation2 + $0x14] ss:$8 sps:$4 sm:$0xff]   ;;  %v700_v17 = vld [vmem:[#allocation2 + $0x10] ss:$8 sps:$4 sm:$0xff]   ;;  %v701_v18 = vld [vmem:[#allocation2 + $0x4] ss:$8 sps:$4 sm:$0xff]  }
  0x23   :  { %677 = vset.pattern.permute.xlu0 %v826_v7  ;;  %v728_v19 = vld [vmem:[#allocation5 + $0x78] sm:$0xff]   ;;  %v730_v21 = vld [vmem:[#allocation5 + $0x70] sm:$0xff]   ;;  %v703_v22 = vld [vmem:[#allocation2] ss:$8 sps:$4 sm:$0xff]   ;;  %v66_v42 = vshrl.u32 %v65_v41, 7  ;;  %s827_s19 = smov [#allocation7]  }
  0x24   :  { %99 = vperm.xlu0 %677, %v56_v2   ;;  %v729_v20 = vld [vmem:[#allocation5 + $0x38] sm:$0xff]   ;;  %v731_v24 = vld [vmem:[#allocation5 + $0x30] sm:$0xff]   ;;  %644 = vmatprep.subr.bf16.mxu1 %v728_v19  ;;  %v732_v25 = vld [vmem:[#allocation5 + $0x68] sm:$0xff]   ;;  %s585_s20 = sshll.u32 %s827_s19, 4  ;;  %s586_s20 = int_to_ptr.vmem [resolvable:$true] %s585_s20 }
  0x25   :  { %361 = vmatpush1.bf16.msra.mxu0 %v685_v6  ;;  %v704_v23 = vld [vmem:[#allocation2 + $0xf4] ss:$8 sps:$4 sm:$0xff]   ;;  %v706_v26 = vld [vmem:[#allocation2 + $0xf0] ss:$8 sps:$4 sm:$0xff]   ;;  %645 = vmatpush3.bf16.msra.mxu1 %v729_v20  ;;  %v707_v27 = vld [vmem:[#allocation2 + $0xe4] ss:$8 sps:$4 sm:$0xff]   ;;  %p797_p11 = scmp.lt.s32.totalorder %s586_s20, %s586_s20 }
  0x26   :  { %362 = vmatprep.subr.bf16.mxu0 %v686_v8  ;;  %646 = vmatprep.subr.bf16.mxu1 %v730_v21  ;;  %v709_v28 = vld [vmem:[#allocation2 + $0xe0] ss:$8 sps:$4 sm:$0xff]   ;;  %v710_v29 = vld [vmem:[#allocation2 + $0xd4] ss:$8 sps:$4 sm:$0xff]   ;;  %v712_v30 = vld [vmem:[#allocation2 + $0xd0] ss:$8 sps:$4 sm:$0xff]  }
  0x27   :  { %v713_v31 = vld [vmem:[#allocation2 + $0xc4] ss:$8 sps:$4 sm:$0xff]   ;;  %v715_v32 = vld [vmem:[#allocation2 + $0xc0] ss:$8 sps:$4 sm:$0xff]   ;;  %v716_v33 = vld [vmem:[#allocation2 + $0xb4] ss:$8 sps:$4 sm:$0xff]  }
  0x28   :  { %679 = vset.pattern.permute.xlu0 %v825_v1  ;;  %v718_v34 = vld [vmem:[#allocation2 + $0xb0] ss:$8 sps:$4 sm:$0xff]   ;;  %v719_v35 = vld [vmem:[#allocation2 + $0xa4] ss:$8 sps:$4 sm:$0xff]   ;;  %v721_v36 = vld [vmem:[#allocation2 + $0xa0] ss:$8 sps:$4 sm:$0xff]  }
  0x29   :  { %363 = vmatpush1.bf16.msra.mxu0 %v688_v9  ;;  %647 = vmatpush3.bf16.msra.mxu1 %v731_v24  ;;  %v722_v37 = vld [vmem:[#allocation2 + $0x94] ss:$8 sps:$4 sm:$0xff]   ;;  %v724_v38 = vld [vmem:[#allocation2 + $0x90] ss:$8 sps:$4 sm:$0xff]   ;;  %v725_v39 = vld [vmem:[#allocation2 + $0x84] ss:$8 sps:$4 sm:$0xff]  }
  0x2a   :  { %364 = vmatprep.subr.bf16.mxu0 %v689_v10  ;;  %648 = vmatprep.subr.bf16.mxu1 %v732_v25  ;;  %v727_v40 = vld [vmem:[#allocation2 + $0x80] ss:$8 sps:$4 sm:$0xff]   ;;  %v877_v43 = vsub.s32 0, %v66_v42  ;;  %v71_v44 = vsub.s32 4, %v66_v42  ;;  %v130_v46 = vsub.s32 2, %v66_v42  ;;  %v134_v47 = vsub.s32 6, %v66_v42 }
  0x2b   :  { %v57_v45 = vld [vmem:[%s907_s1] sm:$0x77]  ;;  %v883_v50 = vsub.s32 1, %v66_v42  ;;  %v108_v51 = vsub.s32 5, %v66_v42  ;;  %v733_v20 = vld [vmem:[#allocation5 + $0x28] sm:$0xff]   ;;  %v737_v24 = vld [vmem:[#allocation5 + $0x18] sm:$0xff]  }
  0x2c   :  { %v68_v48 = vrot.slane %v57_v45, %v877_v43  ;;  %v72_v49 = vrot.slane %v57_v45, %v71_v44  ;;  %v131_v52 = vrot.slane %v57_v45, %v130_v46  ;;  %v135_v53 = vrot.slane %v57_v45, %v134_v47  ;;  %v58_v54 = vld [vmem:[%s908_s2] sm:$0x3]  ;;  %v738_v25 = vld [vmem:[#allocation5 + $0x50] sm:$0xff]   ;;  %s792_s21 = scalar_lea.vmem %s586_s20, 128 }
  0x2d   :  { %365 = vmatpush1.bf16.msra.mxu0 %v691_v11  ;;  %v105_v57 = vrot.slane %v57_v45, %v883_v50  ;;  %v109_v58 = vrot.slane %v57_v45, %v108_v51  ;;  %v89_v60 = vrot.slane %v58_v54, %v877_v43  ;;  %v93_v61 = vrot.slane %v58_v54, %v883_v50  ;;  %v734_v21 = vld [vmem:[#allocation5 + $0x60] sm:$0xff]   ;;  %p793_p10 = scmp.ne.s32.totalorder %s586_s20, %s792_s21  ;;  %p798_p12 = scmp.lt.s32.totalorder %s792_s21, %s792_s21 }
  0x2e   :  { %366 = vmatprep.subr.bf16.mxu0 %v692_v12  ;;  %v78_v55 = vrot.slane %v68_v48, %v877_v43  ;;  %v82_v56 = vrot.slane %v72_v49, %v877_v43  ;;  %v141_v62 = vrot.slane %v131_v52, %v130_v46  ;;  %v145_v63 = vrot.slane %v135_v53, %v130_v46 }
  0x2f   :  { %v115_v2 = vrot.slane %v105_v57, %v883_v50  ;;  %v119_v3 = vrot.slane %v109_v58, %v883_v50  ;;  %649 = vmatpush3.bf16.msra.mxu1 %v733_v20  ;;  %p799_p13 = por %p798_p12, %p797_p11 }
  0x30   :  { %650 = vmatprep.subr.bf16.mxu1 %v734_v21 }
  0x31   :  { %367 = vmatpush1.bf16.msra.mxu0 %v694_v13  ;;  %p800_p0 = pnand %p799_p13, %p793_p10 }
  0x32   :  { %368 = vmatprep.subr.bf16.mxu0 %v695_v14 }
  0x35   :  { %369 = vmatpush1.bf16.msra.mxu0 %v697_v15 }
  0x36   :  { %370 = vmatprep.subr.bf16.mxu0 %v698_v16 }
  0x39   :  { %371 = vmatpush1.bf16.msra.mxu0 %v700_v17 }
  0x3a   :  { %372 = vmatprep.subr.bf16.mxu0 %v701_v18 }
  0x3d   :  { %373 = vmatpush1.bf16.msra.mxu0 %v703_v22  ;;  %v735_v22 = vld [vmem:[#allocation5 + $0x20] sm:$0xff]  }
  0x3e   :  { %374 = vmatprep.subr.bf16.mxu0 %v704_v23  ;;  %651 = vmatpush3.bf16.msra.mxu1 %v735_v22  ;;  %v736_v23 = vld [vmem:[#allocation5 + $0x58] sm:$0xff]  }
  0x3f   :  { %652 = vmatprep.subr.bf16.mxu1 %v736_v23 }
  0x41   :  { %375 = vmatpush2.bf16.msra.mxu0 %v706_v26  ;;  %v739_v26 = vld [vmem:[#allocation5 + $0x10] sm:$0xff]  }
  0x42   :  { %376 = vmatprep.subr.bf16.mxu0 %v707_v27  ;;  %653 = vmatpush3.bf16.msra.mxu1 %v737_v24  ;;  %v740_v27 = vld [vmem:[#allocation5 + $0x48] sm:$0xff]  }
  0x43   :  { %654 = vmatprep.subr.bf16.mxu1 %v738_v25 }
  0x45   :  { %377 = vmatpush2.bf16.msra.mxu0 %v709_v28  ;;  %v741_v28 = vld [vmem:[#allocation5 + $0x8] sm:$0xff]  }
  0x46   :  { %378 = vmatprep.subr.bf16.mxu0 %v710_v29  ;;  %655 = vmatpush3.bf16.msra.mxu1 %v739_v26  ;;  %v742_v29 = vld [vmem:[#allocation5 + $0x40] sm:$0xff]  }
  0x47   :  { %656 = vmatprep.subr.bf16.mxu1 %v740_v27 }
  0x49   :  { %379 = vmatpush2.bf16.msra.mxu0 %v712_v30  ;;  %v743_v30 = vld [vmem:[#allocation5] sm:$0xff]  }
  0x4a   :  { %380 = vmatprep.subr.bf16.mxu0 %v713_v31  ;;  %657 = vmatpush3.bf16.msra.mxu1 %v741_v28  ;;  %v186_v31 = vld [vmem:[%s910_s4] sm:$0x3] }
  0x4b   :  { %658 = vmatprep.subr.bf16.mxu1 %v742_v29 }
  0x4d   :  { %381 = vmatpush2.bf16.msra.mxu0 %v715_v32  ;;  %v191_v32 = vrot.slane %v186_v31, %v877_v43  ;;  %v627_v43 = vld [vmem:[%s912_s6] ss:$0 sm:$0xff] }
  0x4e   :  { %382 = vmatprep.subr.bf16.mxu0 %v716_v33  ;;  %659 = vmatpush3.bf16.msra.mxu1 %v743_v30  ;;  %v195_v33 = vrot.slane %v186_v31, %v883_v50 }
  0x51   :  { %383 = vmatpush2.bf16.msra.mxu0 %v718_v34 }
  0x52   :  { %384 = vmatprep.subr.bf16.mxu0 %v719_v35 }
  0x55   :  { %385 = vmatpush2.bf16.msra.mxu0 %v721_v36 }
  0x56   :  { %386 = vmatprep.subr.bf16.mxu0 %v722_v37 }
  0x59   :  { %387 = vmatpush2.bf16.msra.mxu0 %v724_v38 }
  0x5a   :  { %388 = vmatprep.subr.bf16.mxu0 %v725_v39 }
  0x5d   :  { %389 = vmatpush2.bf16.msra.mxu0 %v727_v40 }
  0x9a   :  { %v62_v59 = vpop.permute.xlu0 %61  ;;  %v126_v4 = vpop.permute.xlu1 %125 }
  0x9b   :  { %v83_v0 = vmul.f32 %v78_v55, %v62_v59  ;;  %v84_v1 = vmul.f32 %v82_v56, %v62_v59  ;;  %v146_v6 = vmul.f32 %v141_v62, %v126_v4  ;;  %v147_v7 = vmul.f32 %v145_v63, %v126_v4 }
  0x9d   :  { %v96_v8 = vadd.f32 %v89_v60, %v83_v0  ;;  %v97_v9 = vadd.f32 %v93_v61, %v84_v1 }
  0x9f   :  { %v100_v5 = vpop.permute.xlu0 %99 }
  0xa0   :  { %v120_v10 = vmul.f32 %v115_v2, %v100_v5  ;;  %v121_v11 = vmul.f32 %v119_v3, %v100_v5 }
  0xa2   :  { %v122_v12 = vadd.f32 %v120_v10, %v96_v8  ;;  %v123_v13 = vadd.f32 %v121_v11, %v97_v9 }
  0xa4   :  { %v148_v14 = vadd.f32 %v146_v6, %v122_v12  ;;  %v149_v15 = vadd.f32 %v147_v7, %v123_v13 }
  0xa6   :  { %v150_v16 = vpack.c.bf16 %v148_v14, %v148_v14  ;;  %v151_v17 = vpack.c.bf16 %v149_v15, %v149_v15 }
  0xa8   :  { %744 = vtanh.bf16 %v150_v16 }
  0xa9   :  { %746 = vtanh.bf16 %v151_v17 }
  0xb6   :  { %v745_v18 = vpop.eup %744 }
  0xb7   :  { %v747_v19 = vpop.eup %746 }
  0xb8   :  { %390 = vmatprep.mubr.bf16.mxu0 %v747_v19 }
  0xb9   :  { %391 = vmatmul.mubr.bf16.vlgmr.msra.gmra.mxu0 %v745_v18 }
 0x179   :  { %v392_v34 = vpop.f32.mrf.mxu0 }
 0x17a   :  { %v393_v35 = vadd.f32 %v392_v34, %v191_v32 }
 0x17b   :  { %v394_v36 = vpop.f32.mrf.mxu0 }
 0x17c   :  { %v395_v37 = vadd.f32 %v394_v36, %v195_v33  ;;  %v399_v38 = vpack.c.bf16 %v393_v35, %v393_v35 }
 0x17d   :  { %v396_v39 = vpop.f32.mrf.mxu0 }
 0x17e   :  { %v400_v40 = vpack.c.bf16 %v395_v37, %v395_v37 }
 0x17f   :  { %v397_v41 = vpop.f32.mrf.mxu0 }
 0x180   :  { %748 = vtanh.bf16 %v400_v40 }
 0x181   :  { %750 = vtanh.bf16 %v399_v38 }
 0x18e   :  { %v749_v42 = vpop.eup %748 }
 0x18f   :  { %v751_v44 = vpop.eup %750  ;;  %570 = vmatprep.mubr.bf16.mxu1 %v749_v42 }
 0x190   :  { %571 = vmatmul.mubr.bf16.vlgmr.msra.gmra.mxu1 %v751_v44 }
 0x250   :  { %v660_v45 = vpop.f32.mrf.mxu1 }
 0x252   :  { %v661_v46 = vpop.f32.mrf.mxu1 }
 0x253   :  { %v662_v47 = vadd.f32 %v661_v46, %v660_v45 }
 0x254   :  { %v663_v48 = vpop.f32.mrf.mxu1 }
 0x255   :  { %v573_v49 = vadd.f32 %v662_v47, %v627_v43 }
 0x256   :  { %v664_v50 = vpop.f32.mrf.mxu1 }
 0x257   :  { %578 = vst [vmem:[#allocation7] sm:$0xff] %v573_v49 }
 0x258   :  { %803 = shalt.err (!%p800_p0)
}
 0x259   :  { %588 = dma.vmem_to_hbm [thread:$0]  %s586_s20, 128, %s913_s7, [#allocation4]  }
 0x25a   :  { %816 = dma.done.wait [#allocation4], 128  }
 0x25b   :  { %817 = vsyncadd [#allocation4], 4294967168 }
 0x25c   :  { %592 = vsyncpa [#allocation3], 1 }
 0x25d   :  { %593 = vsyncpa [#allocation6], 1 }
 0x25e   :  { %594 = vsyncpa [#allocation4], 1 }

</bundles_post_ra>
